<compile_context>
chip_gen: v7x
topology: tpu7x:2x2x1
jax: 0.10.0
libtpu: 0.0.40
codegen_flags: <defaults>
</compile_context>

<pallas_src>
import functools

import jax
import jax.numpy as jnp
from jax import lax
from jax.experimental import pallas as pl
from jax.experimental.pallas import tpu as pltpu


def _round_up(x, m):
    return ((x + m - 1) // m) * m


def _largest_divisor_leq(n, cap):
    cap = max(1, min(n, cap))
    for d in range(cap, 0, -1):
        if n % d == 0:
            return d
    return 1


def _decoder_mlp_kernel(tok_ref, cproj_ref, m12t_ref, w2t_ref, b2t_ref, o_ref,
                        *, vocab):
    """One (batch block, seq tile) step of the fused DecoderMLP forward.

    tok_ref  : [bb, 2, tT]     int32  (row 0 = token[t-2], row 1 = token[t-1])
    cproj_ref: [bb, H, 1]      f32    (per-row cond @ W1c + b1, hoisted)
    m12t_ref : [H, 2V_pad]     f32/bf16  (embedding folded into W1, transposed)
    w2t_ref  : [O, H]          f32/bf16
    b2t_ref  : [O, 1]          f32
    o_ref    : [bb, O, tT]     f32    (feature-major, lane-dense on tT)
    """
    bb = tok_ref.shape[0]
    t_tile = tok_ref.shape[2]
    two_v_pad = m12t_ref.shape[1]
    cdt = m12t_ref.dtype                      # MXU operand dtype (f32 or bf16)

    m12t = m12t_ref[...]                      # [H, 2V_pad]
    w2t = w2t_ref[...]                        # [O, H]
    b2t = b2t_ref[...]                        # [O, 1]
    row = lax.broadcasted_iota(jnp.int32, (two_v_pad, t_tile), 0)

    # Static unroll over the packed batch rows (bb is small, <= 16).
    for r in range(bb):
        tok = tok_ref[r]                      # [2, tT] int32, lane-major
        ids1 = tok[0:1, :]                    # token at position t-2
        ids2 = tok[1:2, :]                    # token at position t-1
        # Transposed one-hot built directly in the MXU operand dtype; rows
        # >= 2*vocab are padding rows of M12 and never match.
        oh_t = (((row == ids1) & (row < vocab)) |
                (row == ids2 + vocab)).astype(cdt)              # [2V_pad, tT]

        # cat(emb1, emb2) @ W1[:2E]  (feature-major): [H,2V_pad]x[2V_pad,tT]
        h_t = lax.dot_general(m12t, oh_t, (((1,), (0,)), ((), ())),
                              preferred_element_type=jnp.float32)  # [H, tT]
        h_t = jnp.tanh(h_t + cproj_ref[r])                         # +[H,1]
        # TODO(synk): training-mode Dropout(p=0.5) / partition_dropout masks
        # omitted; eval-mode dropout is the identity, reproduced here.
        y_t = lax.dot_general(w2t, h_t.astype(cdt), (((1,), (0,)), ((), ())),
                              preferred_element_type=jnp.float32)  # [O, tT]
        o_ref[r] = (y_t + b2t).astype(o_ref.dtype)


def decoder_mlp_pallas(tok_pair, cond_proj, m12t, w2t, b2t, *, vocab,
                       tile_t=2048, mxu_bf16=False):
    """tok_pair: [B, 2, T] int32, cond_proj: [B, H] f32 -> [B, T, O] f32."""
    b, two, t = tok_pair.shape
    assert two == 2
    h = m12t.shape[0]
    o = w2t.shape[0]

    # ---- sequence tile selection (lane-aligned, amortize per-step overhead)
    t8 = _round_up(t, 8)
    if t8 <= tile_t:
        if b == 1 and t8 >= 256:
            # Single batch row: split the seq axis so v7x's two TensorCores
            # both get work (>= 2 grid programs).
            t_tile = _round_up((t8 + 1) // 2, 128)
        else:
            t_tile = t8
    else:
        t_tile = _round_up(min(tile_t, t8), 128)
    t_pad = _round_up(t8, t_tile)
    n_seq_tiles = t_pad // t_tile

    # ---- batch-row packing for short sequences (keeps >= 2 programs if B>1)
    if n_seq_tiles == 1 and b > 1:
        cap = min(max(1, tile_t // max(t_tile, 1)), 16, max(1, b // 2))
        bb = _largest_divisor_leq(b, cap)
    else:
        bb = 1

    if t_pad != t:
        tok_pair = jnp.pad(tok_pair, ((0, 0), (0, 0), (0, t_pad - t)))

    cdt = jnp.bfloat16 if mxu_bf16 else jnp.float32
    m12t_c = m12t.astype(cdt)
    w2t_c = w2t.astype(cdt)
    cproj3 = cond_proj.reshape(b, h, 1)

    grid = (b // bb, n_seq_tiles)   # seq tiles innermost: weights/cond DMA'd once
    kernel = functools.partial(_decoder_mlp_kernel, vocab=vocab)
    out = pl.pallas_call(
        kernel,
        out_shape=jax.ShapeDtypeStruct((b, o, t_pad), jnp.float32),
        grid_spec=pltpu.PrefetchScalarGridSpec(
            num_scalar_prefetch=0,
            grid=grid,
            in_specs=[
                pl.BlockSpec((bb, 2, t_tile), lambda bi, ti: (bi, 0, ti)),
                pl.BlockSpec((bb, h, 1), lambda bi, ti: (bi, 0, 0)),
                pl.BlockSpec(m12t_c.shape, lambda bi, ti: (0, 0)),
                pl.BlockSpec(w2t_c.shape, lambda bi, ti: (0, 0)),
                pl.BlockSpec(b2t.shape, lambda bi, ti: (0, 0)),
            ],
            out_specs=pl.BlockSpec((bb, o, t_tile), lambda bi, ti: (bi, 0, ti)),
        ),
        compiler_params=pltpu.CompilerParams(
            dimension_semantics=("parallel", "parallel"),
            vmem_limit_bytes=32 * 1024 * 1024),
    )(tok_pair, cproj3, m12t_c, w2t_c, b2t)
    # Back to the module's [B, T, O] convention (consumers wanting max perf
    # could keep the lane-dense [B, O, T] layout instead).
    return jnp.swapaxes(out, 1, 2)[:, :t, :]


class DecoderMLPPallas:
    """JAX/Pallas port of DecoderMLP (single hidden layer, eval mode)."""

    def __init__(self, input_size, output_dim, hidden_size=64,
                 internal_embeddings_size=32, key=None):
        if key is None:
            key = jax.random.PRNGKey(0)
        self.output_dim = output_dim
        self.emb_dim = internal_embeddings_size
        self._PAD_TOKEN = output_dim
        self.vocab = output_dim + 1

        inp_size = input_size * 2 + internal_embeddings_size  # mlp in-features
        self.inp_size = inp_size
        # conditioning dim implied by: 2*emb_dim + cond_dim == inp_size
        self.cond_dim = inp_size - 2 * internal_embeddings_size

        k_emb, k_w1, k_b1, k_w2, k_b2 = jax.random.split(key, 5)
        # nn.Embedding default init: N(0, 1)
        self.embedding = jax.random.normal(
            k_emb, (self.vocab, internal_embeddings_size), jnp.float32)
        # nn.Linear default init: U(-1/sqrt(fan_in), 1/sqrt(fan_in)); weights
        # stored [in, out] (transposed vs torch's [out, in]).
        lim1 = 1.0 / (inp_size ** 0.5)
        self.w1 = jax.random.uniform(k_w1, (inp_size, hidden_size),
                                     jnp.float32, -lim1, lim1)
        self.b1 = jax.random.uniform(k_b1, (1, hidden_size),
                                     jnp.float32, -lim1, lim1)
        lim2 = 1.0 / (hidden_size ** 0.5)
        self.w2 = jax.random.uniform(k_w2, (hidden_size, output_dim),
                                     jnp.float32, -lim2, lim2)
        self.b2 = jax.random.uniform(k_b2, (1, output_dim),
                                     jnp.float32, -lim2, lim2)

        # Fold the embedding table into the first Linear once (eval-mode
        # embedding dropout is the identity, so this is exact):
        #   cat(emb1, emb2) @ W1[:2E] == onehot12-contraction with [Emb@W1a ; Emb@W1b]
        e = internal_embeddings_size
        hi = lax.Precision.HIGHEST
        m1 = jnp.dot(self.embedding, self.w1[:e], precision=hi)        # [V, H]
        m2 = jnp.dot(self.embedding, self.w1[e:2 * e], precision=hi)   # [V, H]
        m12 = jnp.concatenate([m1, m2], axis=0)                        # [2V, H]
        two_v_pad = _round_up(2 * self.vocab, 8)                       # sublane-align
        m12 = jnp.pad(m12, ((0, two_v_pad - 2 * self.vocab), (0, 0)))
        # Feature-major (transposed) copies used by the kernel.
        self.m12t = m12.T                                   # [H, 2V_pad]
        self.w1c = self.w1[2 * e:]                          # [C, H]
        self.w2t = self.w2.T                                # [O, H]
        self.b2t = self.b2.reshape(output_dim, 1)           # [O, 1]

    def _token_pairs(self, input_tokens):
        # Teacher-forcing shift: prepend two PAD tokens, take (t-2, t-1) pairs.
        b, t = input_tokens.shape
        pad = jnp.full((b, 2), self._PAD_TOKEN, dtype=input_tokens.dtype)
        it = jnp.concatenate([pad, input_tokens], axis=1)      # [B, T+2]
        prev2 = it[:, :t]
        prev1 = it[:, 1:t + 1]
        return jnp.stack([prev2, prev1], axis=1).astype(jnp.int32)  # [B, 2, T]

    def forward(self, input_tokens, conditioning_vect, partition_dropout=False,
                tile_t=2048, mxu_bf16=False):
        # eval mode -> dropouts are identity; the partition_dropout branch is
        # identical to the plain branch when not training.
        tok_pair = self._token_pairs(input_tokens)
        # Hoisted conditioning projection: [B, C] @ [C, H] + b1 -> [B, H].
        cond_proj = jnp.dot(conditioning_vect, self.w1c,
                            precision=lax.Precision.HIGHEST) + self.b1
        return decoder_mlp_pallas(tok_pair, cond_proj, self.m12t, self.w2t,
                                  self.b2t, vocab=self.vocab,
                                  tile_t=tile_t, mxu_bf16=mxu_bf16)

    def forward_reference(self, input_tokens, conditioning_vect):
        b, t = input_tokens.shape
        pad = jnp.full((b, 2), self._PAD_TOKEN, dtype=input_tokens.dtype)
        it = jnp.concatenate([pad, input_tokens], axis=1)
        emb1 = jnp.take(self.embedding, it[:, :t], axis=0)
        emb2 = jnp.take(self.embedding, it[:, 1:t + 1], axis=0)
        cond = jnp.broadcast_to(conditioning_vect[:, None, :],
                                (b, t, self.cond_dim))
        mlp_in = jnp.concatenate([emb1, emb2, cond], axis=-1)   # [B, T, Fin]
        hi = lax.Precision.HIGHEST
        h = jnp.tanh(jnp.dot(mlp_in, self.w1, precision=hi) + self.b1[0])
        return jnp.dot(h, self.w2, precision=hi) + self.b2[0]


if __name__ == "__main__":
    key = jax.random.PRNGKey(0)
    (k_tok, k_cond, k_params, k_tok2, k_cond2,
     k_tok3, k_cond3) = jax.random.split(key, 7)

    # Small, shape-consistent configuration:
    #   input_size = internal_embeddings_size = 32 -> cond_dim = 32, Fin = 96
    B, T = 2, 8
    INPUT_SIZE = 32
    EMB = 32
    HIDDEN = 64
    OUT_DIM = 16  # vocab = 17, PAD token id = 16

    model = DecoderMLPPallas(INPUT_SIZE, OUT_DIM, hidden_size=HIDDEN,
                             internal_embeddings_size=EMB, key=k_params)

    input_tokens = jax.random.randint(k_tok, (B, T), 0, OUT_DIM, dtype=jnp.int32)
    conditioning_vect = jax.random.normal(k_cond, (B, model.cond_dim), jnp.float32)

    out = jax.block_until_ready(model.forward(input_tokens, conditioning_vect))
    ref = model.forward_reference(input_tokens, conditioning_vect)
    assert out.shape == (B, T, OUT_DIM)
    assert jnp.allclose(out, ref, rtol=1e-4, atol=1e-4), "mismatch vs JAX reference"

    # Check 2: multiple sequence tiles, sequence padding, >1 batch row.
    B2, T2 = 3, 250
    tok2 = jax.random.randint(k_tok2, (B2, T2), 0, OUT_DIM, dtype=jnp.int32)
    cond2 = jax.random.normal(k_cond2, (B2, model.cond_dim), jnp.float32)
    out2 = jax.block_until_ready(model.forward(tok2, cond2, tile_t=128))
    ref2 = model.forward_reference(tok2, cond2)
    assert out2.shape == (B2, T2, OUT_DIM)
    assert jnp.allclose(out2, ref2, rtol=1e-4, atol=1e-4), "mismatch (tiled) vs ref"

    # Check 3: short sequences with several batch rows packed per grid step.
    B3, T3 = 8, 16
    tok3 = jax.random.randint(k_tok3, (B3, T3), 0, OUT_DIM, dtype=jnp.int32)
    cond3 = jax.random.normal(k_cond3, (B3, model.cond_dim), jnp.float32)
    out3 = jax.block_until_ready(model.forward(tok3, cond3))
    ref3 = model.forward_reference(tok3, cond3)
    assert out3.shape == (B3, T3, OUT_DIM)
    assert jnp.allclose(out3, ref3, rtol=1e-4, atol=1e-4), "mismatch (packed) vs ref"

    # Check 4: bf16 MXU-operand path (recommended on v6e/v7x), looser tolerance.
    out_bf = jax.block_until_ready(
        model.forward(tok2, cond2, tile_t=128, mxu_bf16=True))
    assert jnp.allclose(out_bf, ref2, rtol=5e-2, atol=5e-2), "mismatch (bf16) vs ref"

    print("KERNEL_OK")
</pallas_src>

<mosaic_0001>
module attributes {stable_mosaic.version = 11 : i64} {
  func.func @_decoder_mlp_kernel(%arg0: i32, %arg1: i32, %arg2: memref<1x2x8xi32, #tpu.memory_space<vmem>>, %arg3: memref<1x64x1xf32, #tpu.memory_space<vmem>>, %arg4: memref<64x40xf32, #tpu.memory_space<vmem>>, %arg5: memref<16x64xf32, #tpu.memory_space<vmem>>, %arg6: memref<16x1xf32, #tpu.memory_space<vmem>>, %arg7: memref<1x16x8xf32, #tpu.memory_space<vmem>>) attributes {dimension_semantics = [#tpu.dimension_semantics<parallel>, #tpu.dimension_semantics<parallel>], iteration_bounds = array<i64: 2, 1>, scalar_prefetch = 0 : i64, scratch_operands = 0 : i64, tpu.core_type = #tpu.core_type<tc>, window_params = [{transform_indices = @transform_0, window_bounds = array<i64: 1, 2, 8>}, {transform_indices = @transform_1, window_bounds = array<i64: 1, 64, 1>}, {pipeline_mode = #tpu.pipeline_mode<synchronous>, transform_indices = @transform_2, window_bounds = array<i64: 64, 40>}, {pipeline_mode = #tpu.pipeline_mode<synchronous>, transform_indices = @transform_3, window_bounds = array<i64: 16, 64>}, {pipeline_mode = #tpu.pipeline_mode<synchronous>, transform_indices = @transform_4, window_bounds = array<i64: 16, 1>}, {transform_indices = @transform_5, window_bounds = array<i64: 1, 16, 8>}]} {
    %c0 = arith.constant 0 : index
    %c0_0 = arith.constant 0 : index
    %0 = vector.load %arg4[%c0, %c0_0] : memref<64x40xf32, #tpu.memory_space<vmem>>, vector<64x40xf32>
    %c0_1 = arith.constant 0 : index
    %c0_2 = arith.constant 0 : index
    %1 = vector.load %arg5[%c0_1, %c0_2] : memref<16x64xf32, #tpu.memory_space<vmem>>, vector<16x64xf32>
    %c0_3 = arith.constant 0 : index
    %c0_4 = arith.constant 0 : index
    %2 = vector.load %arg6[%c0_3, %c0_4] : memref<16x1xf32, #tpu.memory_space<vmem>>, vector<16x1xf32>
    %3 = tpu.iota {dimensions = array<i32: 0>} : vector<40x8xi32>
    %c0_5 = arith.constant 0 : index
    %c0_6 = arith.constant 0 : index
    %c0_7 = arith.constant 0 : index
    %4 = vector.load %arg2[%c0_5, %c0_6, %c0_7] : memref<1x2x8xi32, #tpu.memory_space<vmem>>, vector<1x2x8xi32>
    %5 = vector.shape_cast %4 : vector<1x2x8xi32> to vector<2x8xi32>
    %6 = vector.extract_strided_slice %5 {offsets = [0, 0], sizes = [1, 8], strides = [1, 1]} : vector<2x8xi32> to vector<1x8xi32>
    %7 = vector.extract_strided_slice %5 {offsets = [1, 0], sizes = [1, 8], strides = [1, 1]} : vector<2x8xi32> to vector<1x8xi32>
    %8 = vector.broadcast %6 : vector<1x8xi32> to vector<40x8xi32>
    %9 = arith.cmpi eq, %3, %8 : vector<40x8xi32>
    %c17_i32 = arith.constant 17 : i32
    %10 = vector.broadcast %c17_i32 : i32 to vector<40x8xi32>
    %11 = arith.cmpi slt, %3, %10 : vector<40x8xi32>
    %12 = arith.andi %9, %11 : vector<40x8xi1>
    %c17_i32_8 = arith.constant 17 : i32
    %13 = vector.broadcast %c17_i32_8 : i32 to vector<1x8xi32>
    %14 = arith.addi %7, %13 : vector<1x8xi32>
    %15 = vector.broadcast %14 : vector<1x8xi32> to vector<40x8xi32>
    %16 = arith.cmpi eq, %3, %15 : vector<40x8xi32>
    %17 = arith.ori %12, %16 : vector<40x8xi1>
    %18 = arith.extui %17 : vector<40x8xi1> to vector<40x8xi32>
    %19 = arith.sitofp %18 : vector<40x8xi32> to vector<40x8xf32>
    %cst = arith.constant dense<0.000000e+00> : vector<64x8xf32>
    %20 = tpu.matmul %0, %19, %cst {dimension_numbers = #tpu.dot_dimension_numbers<[1], [0], [0], [1], [0, 0, 1, 1], [], []>} : vector<64x40xf32>, vector<40x8xf32>, vector<64x8xf32> -> vector<64x8xf32>
    %c0_9 = arith.constant 0 : index
    %c0_10 = arith.constant 0 : index
    %c0_11 = arith.constant 0 : index
    %21 = vector.load %arg3[%c0_9, %c0_10, %c0_11] : memref<1x64x1xf32, #tpu.memory_space<vmem>>, vector<1x64x1xf32>
    %22 = vector.shape_cast %21 : vector<1x64x1xf32> to vector<64x1xf32>
    %23 = vector.broadcast %22 : vector<64x1xf32> to vector<64x8xf32>
    %24 = arith.addf %20, %23 : vector<64x8xf32>
    %25 = math.tanh %24 : vector<64x8xf32>
    %cst_12 = arith.constant dense<0.000000e+00> : vector<16x8xf32>
    %26 = tpu.matmul %1, %25, %cst_12 {dimension_numbers = #tpu.dot_dimension_numbers<[1], [0], [0], [1], [0, 0, 1, 1], [], []>} : vector<16x64xf32>, vector<64x8xf32>, vector<16x8xf32> -> vector<16x8xf32>
    %27 = vector.broadcast %2 : vector<16x1xf32> to vector<16x8xf32>
    %28 = arith.addf %26, %27 : vector<16x8xf32>
    %c0_13 = arith.constant 0 : index
    %c0_14 = arith.constant 0 : index
    %c0_15 = arith.constant 0 : index
    %29 = vector.load %arg7[%c0_13, %c0_14, %c0_15] : memref<1x16x8xf32, #tpu.memory_space<vmem>>, vector<1x16x8xf32>
    %30 = vector.shape_cast %29 : vector<1x16x8xf32> to vector<16x8xf32>
    %31 = vector.shape_cast %28 : vector<16x8xf32> to vector<1x16x8xf32>
    tpu.vector_store %arg7[%c0_13, %c0_14, %c0_15], %31 {strides = array<i32>} : memref<1x16x8xf32, #tpu.memory_space<vmem>>, vector<1x16x8xf32>,
    return
  }
  func.func @transform_0(%arg0: i32, %arg1: i32) -> (i32, i32, i32) {
    %c0_i32 = arith.constant 0 : i32
    %c0_i32_0 = arith.constant 0 : i32
    return %arg0, %c0_i32, %arg1 : i32, i32, i32
  }
  func.func @transform_1(%arg0: i32, %arg1: i32) -> (i32, i32, i32) {
    %c0_i32 = arith.constant 0 : i32
    %c0_i32_0 = arith.constant 0 : i32
    %c0_i32_1 = arith.constant 0 : i32
    return %arg0, %c0_i32, %c0_i32_0 : i32, i32, i32
  }
  func.func @transform_2(%arg0: i32, %arg1: i32) -> (i32, i32) {
    %c0_i32 = arith.constant 0 : i32
    %c0_i32_0 = arith.constant 0 : i32
    %c0_i32_1 = arith.constant 0 : i32
    return %c0_i32, %c0_i32_0 : i32, i32
  }
  func.func @transform_3(%arg0: i32, %arg1: i32) -> (i32, i32) {
    %c0_i32 = arith.constant 0 : i32
    %c0_i32_0 = arith.constant 0 : i32
    %c0_i32_1 = arith.constant 0 : i32
    return %c0_i32, %c0_i32_0 : i32, i32
  }
  func.func @transform_4(%arg0: i32, %arg1: i32) -> (i32, i32) {
    %c0_i32 = arith.constant 0 : i32
    %c0_i32_0 = arith.constant 0 : i32
    %c0_i32_1 = arith.constant 0 : i32
    return %c0_i32, %c0_i32_0 : i32, i32
  }
  func.func @transform_5(%arg0: i32, %arg1: i32) -> (i32, i32, i32) {
    %c0_i32 = arith.constant 0 : i32
    %c0_i32_0 = arith.constant 0 : i32
    return %arg0, %c0_i32, %arg1 : i32, i32, i32
  }
}

</mosaic_0001>

<bundles_post_ra>
// kernel: tpu_custom_call.1
= control target key start
LH: loop header
LB: loop body
LE: loop exit
PB: predicated region body
PF: predicated region fallthrough
CT: control target
= control target key end

     0   :  { %s933_s18 = smov 0   ;;  %s935_s19 = smov 0   ;;  %s1030_s0 = inlined_call_operand.vmem [shape: s32[2,2,8], index: 0, kind: input, shape index: {}]   ;;  %s1031_s1 = inlined_call_operand.vmem [shape: f32[2,64,1], index: 1, kind: input, shape index: {}]   ;;  %s1032_s2 = inlined_call_operand.vmem [shape: f32[64,40], index: 2, kind: input, shape index: {}]   ;;  %s1033_s3 = inlined_call_operand.vmem [shape: f32[16,64], index: 3, kind: input, shape index: {}]   ;;  %s1034_s4 = inlined_call_operand.vmem [shape: f32[16,1], index: 4, kind: input, shape index: {}]   ;;  %s1035_s5 = inlined_call_operand.vmem [shape: f32[2,16,8], index: 5, kind: output, shape index: {}]  }
   0x1   :  { %s937_s20 = smov 0  }
   0x2 LB: > { %s27_s21 = sadd.s32 1, %s894_s19  ;;  %p713_p0 = scmp.ge.s32.totalorder %s898_s20, 1  ;;  %s898_s20 = sphi %s937_s20, %s15_s20   ;;  %s894_s19 = sphi %s935_s19, %s1037_s19   ;;  %s890_s18 = sphi %s933_s18, %s1036_s18  }
   0x3   : > { %p29_p1 = scmp.ge.s32.totalorder %s27_s21, 2  ;;  %p215_p2 = scmp.lt.s32.totalorder %s898_s20, 3 }
   0x5   : > { %s1039_s21 = smov (%p29_p1, %s27_s21), 0  ;;  %p216_p3 = pnand %p713_p0, %p215_p2 }
   0x6   : > { %p253_p4 = scmp.lt.s32.totalorder (!%p216_p3), %s890_s18, 1  ;;  %v285_v0 = vlaneseq (!%p216_p3)  ;;  %v273_v1 = vld [vmem:[%s1032_s2] sm:$0xff] (!%p216_p3)  ;;  %vm384_vm0 = vcmask (!%p216_p3), 326656   ;;  %v900_v3 = vmov (!%p216_p3), 0   ;;  %v901_v20 = vmov (!%p216_p3), 1.0|1.0  }
   0x7   : > { %219 = sbr.rel (%p216_p3) target bundleno = 496 (0x1f0), region = 40  ;;  %776 = vmatprep.mubr.msk.f32.mxu0 (!%p216_p3), %vm384_vm0, %v273_v1  ;;  %858 = vset.pattern.permute.xlu0 (!%p216_p3), %v900_v3  ;;  %v283_v23 = vld [vmem:[%s1034_s4] sm:$0xff] (!%p216_p3)  ;;  %v902_v24 = vmov (!%p216_p3), 1.0   ;;  %v284_v25 = vld [vmem:[%s1034_s4 + $0x8] sm:$0xff] (!%p216_p3)  ;;  %v275_v27 = vld [vmem:[%s1032_s2 + $0x10] sm:$0xff] (!%p216_p3) }
   0x8   : > { %v286_v2 = vshrl.u32 (!%p216_p3), %v285_v0, 7  ;;  %859 = vset.pattern.permute.xlu1 (!%p216_p3), %v900_v3  ;;  %v274_v26 = vld [vmem:[%s1032_s2 + $0x8] sm:$0xff] (!%p216_p3)  ;;  %v276_v28 = vld [vmem:[%s1032_s2 + $0x18] sm:$0xff] (!%p216_p3)  ;;  %v277_v29 = vld [vmem:[%s1032_s2 + $0x20] sm:$0xff] (!%p216_p3) }
   0x9   : > { %v278_v30 = vld [vmem:[%s1032_s2 + $0x28] sm:$0xff] (!%p216_p3)  ;;  %v279_v31 = vld [vmem:[%s1032_s2 + $0x30] sm:$0xff] (!%p216_p3)  ;;  %v280_v32 = vld [vmem:[%s1032_s2 + $0x38] sm:$0xff] (!%p216_p3) }
   0xa   : > { %v294_v4 = vsub.s32 (!%p216_p3), 0, %v286_v2  ;;  %v288_v5 = vadd.s32 (!%p216_p3), 16, %v286_v2  ;;  %v314_v6 = vsub.s32 (!%p216_p3), 1, %v286_v2  ;;  %v287_v7 = vadd.s32 (!%p216_p3), 8, %v286_v2  ;;  %v281_v33 = vld [vmem:[%s1033_s3] sm:$0xff] (!%p216_p3) }
   0xb   : > { %v289_v15 = vadd.s32 (!%p216_p3), 24, %v286_v2  ;;  %v290_v19 = vadd.s32 (!%p216_p3), 32, %v286_v2 }
   0xc   : > { %vm303_vm1 = vcmp.lt.s32.totalorder (!%p216_p3), %v288_v5, 17 }
   0xe   : > { %s1041_s18 = smov (!%p253_p4, %s890_s18), 1 }
   0xf   : > { %s714_s24 = sshll.u32 %s1041_s18, 1  ;;  %s741_s25 = sshll.u32 %s1041_s18, 6 }
  0x10   : > { %s259_s28 = scalar_lea.vmem %s1030_s0, %s714_s24  ;;  %s965_s6 = scalar_lea.vmem %s1031_s1, %s741_s25 }
  0x11   : > { %v291_v8 = vld [vmem:[%s259_s28] sm:$0x3]  ;;  %v338_v10 = vld [vmem:[%s965_s6 + $0x10] sm:$0xff]  ;;  %v337_v13 = vld [vmem:[%s965_s6 + $0x8] sm:$0xff]  ;;  %s742_s8 = sshll.u32 %s1041_s18, 4 }
  0x12   : > { %v336_v9 = vld [vmem:[%s965_s6] sm:$0xff]  ;;  %v295_v11 = vrot.slane %v291_v8, %v294_v4  ;;  %v311_v12 = vadd.s32 17, %v291_v8  ;;  %356 = vperm.xlu1 %859, %v338_v10   ;;  %v339_v16 = vld [vmem:[%s965_s6 + $0x18] sm:$0xff]  ;;  %v341_v18 = vld [vmem:[%s965_s6 + $0x28] sm:$0xff]  ;;  %s272_s11 = scalar_lea.vmem %s1035_s5, %s742_s8 }
  0x13   : > { %346 = vperm.xlu0 %858, %v336_v9   ;;  %v340_v17 = vld [vmem:[%s965_s6 + $0x20] sm:$0xff]  ;;  %v342_v21 = vld [vmem:[%s965_s6 + $0x30] sm:$0xff]  ;;  %v343_v22 = vld [vmem:[%s965_s6 + $0x38] sm:$0xff] }
  0x14   : > { %vm296_vm2 = vcmp.eq.s32.totalorder %v286_v2, %v295_v11  ;;  %v315_v14 = vrot.slane %v311_v12, %v314_v6  ;;  %vm298_vm3 = vcmp.eq.s32.totalorder %v288_v5, %v295_v11  ;;  %vm297_vm4 = vcmp.eq.s32.totalorder %v287_v7, %v295_v11  ;;  %v282_v6 = vld [vmem:[%s1033_s3 + $0x8] sm:$0xff] }
  0x15   : > { %vm308_vm7 = vmand %vm298_vm3, %vm303_vm1  ;;  %vm532_vm1 = vcmask 523264  }
  0x16   : > { %vm316_vm5 = vcmp.eq.s32.totalorder %v286_v2, %v315_v14  ;;  %vm317_vm6 = vcmp.eq.s32.totalorder %v287_v7, %v315_v14  ;;  %vm318_vm9 = vcmp.eq.s32.totalorder %v288_v5, %v315_v14  ;;  %361 = vperm.xlu1 %859, %v339_v16   ;;  %vm319_vm11 = vcmp.eq.s32.totalorder %v289_v15, %v315_v14 }
  0x17   : > { %351 = vperm.xlu0 %858, %v337_v13   ;;  %vm321_vm8 = vmor %vm296_vm2, %vm316_vm5  ;;  %vm320_vm15 = vcmp.eq.s32.totalorder %v290_v19, %v315_v14  ;;  %804 = vmatprep.mubr.msk.f32.mxu1 %vm532_vm1, %v281_v33 }
  0x18   : > { %vm322_vm10 = vmor %vm297_vm4, %vm317_vm6 }
  0x19   : > { %vm807_vm12 = vmpackc.low %vm322_vm10, %vm321_vm8 }
  0x1a   : > { %808 = vmatprep.subr.msk.bf16.mxu0 %vm807_vm12, %v901_v20  ;;  %vm323_vm13 = vmor %vm308_vm7, %vm318_vm9  ;;  %371 = vperm.xlu1 %859, %v341_v18  }
  0x1b   : > { %366 = vperm.xlu0 %858, %v340_v17   ;;  %810 = vmatpush3.bf16.msk.msra.mxu0 %vm807_vm12, %v901_v20  ;;  %vm811_vm14 = vmpackc.low %vm319_vm11, %vm323_vm13 }
  0x1c   : > { %812 = vmatprep.subr.msk.bf16.mxu0 %vm811_vm14, %v901_v20 }
  0x1e   : > { %381 = vperm.xlu1 %859, %v343_v22  }
  0x1f   : > { %376 = vperm.xlu0 %858, %v342_v21   ;;  %814 = vmatpush3.bf16.msk.msra.mxu0 %vm811_vm14, %v901_v20 }
  0x20   : > { %774 = vmatprep.subr.msk.mxu0 %vm320_vm15, %v902_v24 }
  0x22   : > { %529 = vperm.xlu1 %859, %v284_v25  }
  0x23   : > { %524 = vperm.xlu0 %858, %v283_v23   ;;  %775 = vmatpush3.msk.msra.mxu0 %vm320_vm15, %v902_v24 }
  0x24   : > { %777 = vmatmul.mubr.msk.f32.vlgmr.msra.gmra.mrb[0].mxu0 %vm384_vm0, %v274_v26 }
  0x25   : > { %779 = vmatprep.mubr.msk.f32.mxu0 %vm384_vm0, %v275_v27 }
  0x28   : > { %780 = vmatmul.mubr.msk.f32.gmra.mrb[2].mxu0 %vm384_vm0, %v276_v28 }
  0x29   : > { %782 = vmatprep.mubr.msk.f32.mxu0 %vm384_vm0, %v277_v29 }
  0x2c   : > { %783 = vmatmul.mubr.msk.f32.gmra.mrb[4].mxu0 %vm384_vm0, %v278_v30 }
  0x2d   : > { %785 = vmatprep.mubr.msk.f32.mxu0 %vm384_vm0, %v279_v31 }
  0x30   : > { %786 = vmatmul.mubr.msk.f32.gmra.mrb[6].mxu0 %vm384_vm0, %v280_v32  ;;  %vm614_vm0 = vcmask 64512  }
  0x91   : > { %v357_v35 = vpop.permute.xlu1 %356 }
  0x92   : > { %v347_v34 = vpop.permute.xlu0 %346 }
  0x95   : > { %v362_v37 = vpop.permute.xlu1 %361 }
  0x96   : > { %v352_v36 = vpop.permute.xlu0 %351 }
  0x99   : > { %v372_v45 = vpop.permute.xlu1 %371 }
  0x9a   : > { %v367_v47 = vpop.permute.xlu0 %366 }
  0x9d   : > { %v382_v52 = vpop.permute.xlu1 %381 }
  0x9e   : > { %v377_v55 = vpop.permute.xlu0 %376 }
  0xa1   : > { %v530_v7 = vpop.permute.xlu1 %529 }
  0xa2   : > { %v525_v9 = vpop.permute.xlu0 %524 }
  0xf7   : > { %v778_v38 = vpop.f32.mrb[0].mxu0 }
  0xf8   : > { %v481_v39 = vadd.f32 %v778_v38, %v352_v36  ;;  %v475_v40 = vpop.f32.mrb[1].mxu0 }
  0xf9   : > { %v476_v41 = vadd.f32 %v475_v40, %v347_v34 }
  0xfa   : > { %860 = vtanh.f32 %v481_v39 }
  0xfb   : > { %862 = vtanh.f32 %v476_v41  ;;  %v781_v42 = vpop.f32.mrb[2].mxu0 }
  0xfc   : > { %v491_v43 = vadd.f32 %v781_v42, %v362_v37  ;;  %v485_v44 = vpop.f32.mrb[3].mxu0 }
  0xfd   : > { %v486_v46 = vadd.f32 %v485_v44, %v357_v35 }
  0xfe   : > { %864 = vtanh.f32 %v491_v43 }
  0xff   : > { %866 = vtanh.f32 %v486_v46  ;;  %v784_v48 = vpop.f32.mrb[4].mxu0 }
 0x100   : > { %v501_v49 = vadd.f32 %v784_v48, %v372_v45  ;;  %v495_v50 = vpop.f32.mrb[5].mxu0 }
 0x101   : > { %v496_v51 = vadd.f32 %v495_v50, %v367_v47 }
 0x102   : > { %868 = vtanh.f32 %v501_v49 }
 0x103   : > { %870 = vtanh.f32 %v496_v51  ;;  %v787_v53 = vpop.f32.mrb[6].mxu0 }
 0x104   : > { %v861_v54 = vpop.eup %860  ;;  %v511_v56 = vadd.f32 %v787_v53, %v382_v52  ;;  %v505_v57 = vpop.f32.mrb[7].mxu0 }
 0x105   : > { %v863_v58 = vpop.eup %862  ;;  %v506_v59 = vadd.f32 %v505_v57, %v377_v55 }
 0x106   : > { %872 = vtanh.f32 %v511_v56  ;;  %v815_v60 = vpack.c.bf16 %v861_v54, %v863_v58 }
 0x107   : > { %874 = vtanh.f32 %v506_v59 }
 0x108   : > { %v865_v61 = vpop.eup %864  ;;  %816 = vmatprep.subr.bf16.mxu1 %v815_v60 }
 0x109   : > { %v867_v62 = vpop.eup %866  ;;  %818 = vmatpush3.bf16.msra.mxu1 %v815_v60 }
 0x10a   : > { %v819_v63 = vpack.c.bf16 %v865_v61, %v867_v62 }
 0x10c   : > { %v869_v0 = vpop.eup %868  ;;  %820 = vmatprep.subr.bf16.mxu1 %v819_v63 }
 0x10d   : > { %v871_v1 = vpop.eup %870  ;;  %822 = vmatpush3.bf16.msra.mxu1 %v819_v63 }
 0x10e   : > { %v823_v2 = vpack.c.bf16 %v869_v0, %v871_v1 }
 0x110   : > { %v873_v3 = vpop.eup %872  ;;  %824 = vmatprep.subr.bf16.mxu1 %v823_v2 }
 0x111   : > { %v875_v4 = vpop.eup %874  ;;  %826 = vmatpush3.bf16.msra.mxu1 %v823_v2 }
 0x112   : > { %v827_v5 = vpack.c.bf16 %v873_v3, %v875_v4 }
 0x114   : > { %828 = vmatprep.subr.bf16.mxu1 %v827_v5 }
 0x115   : > { %830 = vmatpush3.bf16.msra.mxu1 %v827_v5 }
 0x118   : > { %805 = vmatmul.mubr.msk.f32.vlgmr.msra.gmra.mrb[0].mxu1 %vm532_vm1, %v282_v6 }
 0x1eb   : > { %v806_v8 = vpop.f32.mrb[0].mxu1 }
 0x1ec   : > { %v611_v10 = vadd.f32 %v806_v8, %v530_v7  ;;  %v605_v11 = vpop.f32.mrb[1].mxu1 }
 0x1ed   : > { %v606_v12 = vadd.f32 %v605_v11, %v525_v9 }
 0x1ee   : > { %616 = vst.msk [vmem:[%s272_s11 + $0x8] sm:$0xff] %vm614_vm0, %v611_v10 }
 0x1ef   : > { %615 = vst.msk [vmem:[%s272_s11] sm:$0xff] %vm614_vm0, %v606_v12 }
 0x1f0 PF: > { %s15_s20 = sadd.s32 1, %s898_s20   ;;  %s1036_s18 = smov %s894_s19 }
 0x1f1   : > { %p12_p5 = scmp.ge.s32.totalorder %s15_s20, 4   ;;  %s1037_s19 = smov %s1039_s21 }
 0x1f3   :  { %14 = sbr.rel (!%p12_p5) target bundleno = 2 (0x2), region = 73 }

</bundles_post_ra>
